<compile_context>
chip_gen: v7x
topology: tpu7x:2x2x1
jax: 0.10.0
libtpu: 0.0.40
codegen_flags: <defaults>
</compile_context>

<pallas_src>
import functools

import jax
import jax.numpy as jnp
from jax.experimental import pallas as pl
from jax.experimental.pallas import tpu as pltpu


def _round_up(x: int, m: int) -> int:
    return ((x + m - 1) // m) * m


def _make_actor_kernel(num_layers: int, action_limit: float):
    """Fused kernel: all linear layers + activations in one pass over a batch tile."""

    def kernel(*refs):
        x_ref = refs[0]
        o_ref = refs[-1]
        param_refs = refs[1:-1]  # w0, b0, w1, b1, ..., w_{L-1}, b_{L-1}

        h = x_ref[...]
        if h.dtype != jnp.float32:
            h = h.astype(jnp.float32)

        for i in range(num_layers):
            w = param_refs[2 * i][...]          # possibly bf16 (MXU operand)
            b = param_refs[2 * i + 1][...]      # always f32
            lhs = h.astype(w.dtype) if h.dtype != w.dtype else h
            h = jnp.dot(lhs, w, preferred_element_type=jnp.float32) + b
            if i < num_layers - 1:
                h = jnp.maximum(h, 0.0)                          # ReLU (VPU, f32)
            else:
                h = jnp.tanh(h) * jnp.float32(action_limit)      # Tanh (EUP) + scale

        o_ref[...] = h.astype(o_ref.dtype)

    return kernel


@functools.partial(jax.jit,
                   static_argnames=("action_limit", "batch_tile", "mxu_dtype"))
def mlp_actor_forward(observation, params, *, action_limit,
                      batch_tile: int = 256, mxu_dtype=jnp.float32):
    """Fused MLPActor forward.

    observation: (B, obs_dim) float32
    params:      list of (W, b) with W: (in_dim, out_dim), b: (1, out_dim)
                 (equivalent to PyTorch x @ W.T + b with W of shape (out, in))
    Returns (B, act_dim) in observation.dtype.
    """
    B, obs_dim = observation.shape
    num_layers = len(params)
    act_dim = params[-1][0].shape[1]

    # ---- lane-pad every layer width to a multiple of 128 ---------------------
    sizes = [obs_dim] + [w.shape[1] for (w, _) in params]
    padded = [_round_up(s, 128) for s in sizes]

    # ---- batch tiling: tile multiple of 8, batch padded to multiple of tile --
    b_pad8 = _round_up(B, 8)
    tile = max(8, _round_up(int(batch_tile), 8))
    tile = min(tile, b_pad8)
    b_pad = _round_up(b_pad8, tile)
    grid = (b_pad // tile,)

    obs_p = jnp.zeros((b_pad, padded[0]), observation.dtype)
    obs_p = obs_p.at[:B, :obs_dim].set(observation)

    # ---- pad + flatten parameters, build specs --------------------------------
    flat_params = []
    in_specs = [pl.BlockSpec((tile, padded[0]), lambda i: (i, 0))]
    for li, (w, b) in enumerate(params):
        in_p, out_p = padded[li], padded[li + 1]
        w_p = jnp.zeros((in_p, out_p), mxu_dtype)
        w_p = w_p.at[:w.shape[0], :w.shape[1]].set(w.astype(mxu_dtype))
        b_p = jnp.zeros((1, out_p), jnp.float32)
        b_p = b_p.at[:, :b.shape[1]].set(b.astype(jnp.float32))
        flat_params.append(w_p)
        flat_params.append(b_p)
        # Constant index_map -> resident across the grid; single-buffer them.
        in_specs.append(pl.BlockSpec((in_p, out_p), lambda i: (0, 0),
                                     pipeline_mode=pl.Buffered(1)))
        in_specs.append(pl.BlockSpec((1, out_p), lambda i: (0, 0),
                                     pipeline_mode=pl.Buffered(1)))
    out_specs = pl.BlockSpec((tile, padded[-1]), lambda i: (i, 0))

    # ---- cost estimate + VMEM budget ------------------------------------------
    flops = 2 * b_pad * sum(padded[i] * padded[i + 1] for i in range(num_layers))
    transcendentals = b_pad * padded[-1]  # tanh on the output layer
    weight_bytes = sum(
        padded[i] * padded[i + 1] * jnp.dtype(mxu_dtype).itemsize + padded[i + 1] * 4
        for i in range(num_layers)
    )
    bytes_accessed = (b_pad * padded[0] * 4) + weight_bytes + (b_pad * padded[-1] * 4)
    cost = pl.CostEstimate(flops=int(flops),
                           transcendentals=int(transcendentals),
                           bytes_accessed=int(bytes_accessed))

    vmem_est = (
        2 * tile * padded[0] * 4          # double-buffered input tile
        + 2 * tile * padded[-1] * 4       # double-buffered output tile
        + weight_bytes                    # single-buffered residents
        + 2 * tile * max(padded) * 4      # live activations headroom
    )
    cp_kwargs = dict(dimension_semantics=("parallel",))
    if vmem_est > 32 * 1024 * 1024:
        cp_kwargs["vmem_limit_bytes"] = int(min(vmem_est * 1.25, 120 * 1024 * 1024))

    kernel = _make_actor_kernel(num_layers, float(action_limit))

    out_padded = pl.pallas_call(
        kernel,
        out_shape=jax.ShapeDtypeStruct((b_pad, padded[-1]), observation.dtype),
        grid=grid,
        in_specs=in_specs,
        out_specs=out_specs,
        compiler_params=pltpu.CompilerParams(**cp_kwargs),
        cost_estimate=cost,
    )(obs_p, *flat_params)

    return out_padded[:B, :act_dim]


def init_actor_params(key, obs_dim, act_dim, hidden_sizes):
    """PyTorch-Linear-like init: U(-1/sqrt(fan_in), 1/sqrt(fan_in))."""
    sizes = [obs_dim] + list(hidden_sizes) + [act_dim]
    params = []
    for j in range(len(sizes) - 1):
        fan_in, fan_out = sizes[j], sizes[j + 1]
        key, kw, kb = jax.random.split(key, 3)
        bound = 1.0 / jnp.sqrt(jnp.float32(fan_in))
        w = jax.random.uniform(kw, (fan_in, fan_out), jnp.float32, -bound, bound)
        b = jax.random.uniform(kb, (1, fan_out), jnp.float32, -bound, bound)
        params.append((w, b))
    return params


def mlp_actor_reference(observation, params, action_limit):
    """Pure-JAX reference for correctness checking."""
    h = observation
    n = len(params)
    for i, (w, b) in enumerate(params):
        h = h @ w + b
        h = jnp.maximum(h, 0.0) if i < n - 1 else jnp.tanh(h)
    return action_limit * h


if __name__ == "__main__":
    key = jax.random.PRNGKey(0)

    obs_dim = 16
    act_dim = 4
    hidden_sizes = (32, 32)
    action_limit = 2.0

    key, k_params = jax.random.split(key)
    params = init_actor_params(k_params, obs_dim, act_dim, hidden_sizes)

    # Test 1: ragged batch (60 rows), f32 MXU operands, batch_tile=16 -> grid=(4,)
    key, k_obs1 = jax.random.split(key)
    obs1 = jax.random.normal(k_obs1, (60, obs_dim), jnp.float32)
    out1 = jax.block_until_ready(
        mlp_actor_forward(obs1, params, action_limit=action_limit, batch_tile=16))
    ref1 = mlp_actor_reference(obs1, params, action_limit)
    assert out1.shape == (60, act_dim), out1.shape
    assert jnp.allclose(out1, ref1, atol=1e-5, rtol=1e-5), (
        float(jnp.max(jnp.abs(out1 - ref1))))

    # Test 2: bf16 MXU weights (f32 elementwise path), batch=64, batch_tile=16
    key, k_obs2 = jax.random.split(key)
    obs2 = jax.random.normal(k_obs2, (64, obs_dim), jnp.float32)
    out2 = jax.block_until_ready(
        mlp_actor_forward(obs2, params, action_limit=action_limit, batch_tile=16,
                          mxu_dtype=jnp.bfloat16))
    ref2 = mlp_actor_reference(obs2, params, action_limit)
    assert out2.shape == (64, act_dim), out2.shape
    assert jnp.allclose(out2, ref2, atol=5e-2, rtol=5e-2), (
        float(jnp.max(jnp.abs(out2 - ref2))))

    print("KERNEL_OK")
</pallas_src>

<mosaic_0001>
module attributes {stable_mosaic.version = 11 : i64} {
  func.func @kernel(%arg0: i32, %arg1: memref<16x128xf32, #tpu.memory_space<vmem>>, %arg2: memref<128x128xf32, #tpu.memory_space<vmem>>, %arg3: memref<1x128xf32, #tpu.memory_space<vmem>>, %arg4: memref<128x128xf32, #tpu.memory_space<vmem>>, %arg5: memref<1x128xf32, #tpu.memory_space<vmem>>, %arg6: memref<128x128xf32, #tpu.memory_space<vmem>>, %arg7: memref<1x128xf32, #tpu.memory_space<vmem>>, %arg8: memref<16x128xf32, #tpu.memory_space<vmem>>) attributes {dimension_semantics = [#tpu.dimension_semantics<parallel>], iteration_bounds = array<i64: 4>, scalar_prefetch = 0 : i64, scratch_operands = 0 : i64, tpu.core_type = #tpu.core_type<tc>, window_params = [{transform_indices = @transform_0, window_bounds = array<i64: 16, 128>}, {pipeline_mode = #tpu.pipeline_mode<synchronous>, transform_indices = @transform_1, window_bounds = array<i64: 128, 128>}, {pipeline_mode = #tpu.pipeline_mode<synchronous>, transform_indices = @transform_2, window_bounds = array<i64: 1, 128>}, {pipeline_mode = #tpu.pipeline_mode<synchronous>, transform_indices = @transform_3, window_bounds = array<i64: 128, 128>}, {pipeline_mode = #tpu.pipeline_mode<synchronous>, transform_indices = @transform_4, window_bounds = array<i64: 1, 128>}, {pipeline_mode = #tpu.pipeline_mode<synchronous>, transform_indices = @transform_5, window_bounds = array<i64: 128, 128>}, {pipeline_mode = #tpu.pipeline_mode<synchronous>, transform_indices = @transform_6, window_bounds = array<i64: 1, 128>}, {transform_indices = @transform_7, window_bounds = array<i64: 16, 128>}]} {
    %c0 = arith.constant 0 : index
    %c0_0 = arith.constant 0 : index
    %0 = vector.load %arg1[%c0, %c0_0] : memref<16x128xf32, #tpu.memory_space<vmem>>, vector<16x128xf32>
    %c0_1 = arith.constant 0 : index
    %c0_2 = arith.constant 0 : index
    %1 = vector.load %arg2[%c0_1, %c0_2] : memref<128x128xf32, #tpu.memory_space<vmem>>, vector<128x128xf32>
    %c0_3 = arith.constant 0 : index
    %c0_4 = arith.constant 0 : index
    %2 = vector.load %arg3[%c0_3, %c0_4] : memref<1x128xf32, #tpu.memory_space<vmem>>, vector<1x128xf32>
    %cst = arith.constant dense<0.000000e+00> : vector<16x128xf32>
    %3 = tpu.matmul %0, %1, %cst {dimension_numbers = #tpu.dot_dimension_numbers<[1], [0], [0], [1], [0, 0, 1, 1], [], []>} : vector<16x128xf32>, vector<128x128xf32>, vector<16x128xf32> -> vector<16x128xf32>
    %4 = vector.broadcast %2 : vector<1x128xf32> to vector<16x128xf32>
    %5 = arith.addf %3, %4 : vector<16x128xf32>
    %cst_5 = arith.constant 0.000000e+00 : f32
    %6 = vector.broadcast %cst_5 : f32 to vector<16x128xf32>
    %7 = arith.maximumf %5, %6 : vector<16x128xf32>
    %c0_6 = arith.constant 0 : index
    %c0_7 = arith.constant 0 : index
    %8 = vector.load %arg4[%c0_6, %c0_7] : memref<128x128xf32, #tpu.memory_space<vmem>>, vector<128x128xf32>
    %c0_8 = arith.constant 0 : index
    %c0_9 = arith.constant 0 : index
    %9 = vector.load %arg5[%c0_8, %c0_9] : memref<1x128xf32, #tpu.memory_space<vmem>>, vector<1x128xf32>
    %cst_10 = arith.constant dense<0.000000e+00> : vector<16x128xf32>
    %10 = tpu.matmul %7, %8, %cst_10 {dimension_numbers = #tpu.dot_dimension_numbers<[1], [0], [0], [1], [0, 0, 1, 1], [], []>} : vector<16x128xf32>, vector<128x128xf32>, vector<16x128xf32> -> vector<16x128xf32>
    %11 = vector.broadcast %9 : vector<1x128xf32> to vector<16x128xf32>
    %12 = arith.addf %10, %11 : vector<16x128xf32>
    %cst_11 = arith.constant 0.000000e+00 : f32
    %13 = vector.broadcast %cst_11 : f32 to vector<16x128xf32>
    %14 = arith.maximumf %12, %13 : vector<16x128xf32>
    %c0_12 = arith.constant 0 : index
    %c0_13 = arith.constant 0 : index
    %15 = vector.load %arg6[%c0_12, %c0_13] : memref<128x128xf32, #tpu.memory_space<vmem>>, vector<128x128xf32>
    %c0_14 = arith.constant 0 : index
    %c0_15 = arith.constant 0 : index
    %16 = vector.load %arg7[%c0_14, %c0_15] : memref<1x128xf32, #tpu.memory_space<vmem>>, vector<1x128xf32>
    %cst_16 = arith.constant dense<0.000000e+00> : vector<16x128xf32>
    %17 = tpu.matmul %14, %15, %cst_16 {dimension_numbers = #tpu.dot_dimension_numbers<[1], [0], [0], [1], [0, 0, 1, 1], [], []>} : vector<16x128xf32>, vector<128x128xf32>, vector<16x128xf32> -> vector<16x128xf32>
    %18 = vector.broadcast %16 : vector<1x128xf32> to vector<16x128xf32>
    %19 = arith.addf %17, %18 : vector<16x128xf32>
    %20 = math.tanh %19 : vector<16x128xf32>
    %cst_17 = arith.constant 2.000000e+00 : f32
    %21 = vector.broadcast %cst_17 : f32 to vector<16x128xf32>
    %22 = arith.mulf %20, %21 : vector<16x128xf32>
    %c0_18 = arith.constant 0 : index
    %c0_19 = arith.constant 0 : index
    %23 = vector.load %arg8[%c0_18, %c0_19] : memref<16x128xf32, #tpu.memory_space<vmem>>, vector<16x128xf32>
    tpu.vector_store %arg8[%c0_18, %c0_19], %22 {strides = array<i32>} : memref<16x128xf32, #tpu.memory_space<vmem>>, vector<16x128xf32>,
    return
  }
  func.func @transform_0(%arg0: i32) -> (i32, i32) {
    %c0_i32 = arith.constant 0 : i32
    %c0_i32_0 = arith.constant 0 : i32
    return %arg0, %c0_i32 : i32, i32
  }
  func.func @transform_1(%arg0: i32) -> (i32, i32) {
    %c0_i32 = arith.constant 0 : i32
    %c0_i32_0 = arith.constant 0 : i32
    %c0_i32_1 = arith.constant 0 : i32
    return %c0_i32, %c0_i32_0 : i32, i32
  }
  func.func @transform_2(%arg0: i32) -> (i32, i32) {
    %c0_i32 = arith.constant 0 : i32
    %c0_i32_0 = arith.constant 0 : i32
    %c0_i32_1 = arith.constant 0 : i32
    return %c0_i32, %c0_i32_0 : i32, i32
  }
  func.func @transform_3(%arg0: i32) -> (i32, i32) {
    %c0_i32 = arith.constant 0 : i32
    %c0_i32_0 = arith.constant 0 : i32
    %c0_i32_1 = arith.constant 0 : i32
    return %c0_i32, %c0_i32_0 : i32, i32
  }
  func.func @transform_4(%arg0: i32) -> (i32, i32) {
    %c0_i32 = arith.constant 0 : i32
    %c0_i32_0 = arith.constant 0 : i32
    %c0_i32_1 = arith.constant 0 : i32
    return %c0_i32, %c0_i32_0 : i32, i32
  }
  func.func @transform_5(%arg0: i32) -> (i32, i32) {
    %c0_i32 = arith.constant 0 : i32
    %c0_i32_0 = arith.constant 0 : i32
    %c0_i32_1 = arith.constant 0 : i32
    return %c0_i32, %c0_i32_0 : i32, i32
  }
  func.func @transform_6(%arg0: i32) -> (i32, i32) {
    %c0_i32 = arith.constant 0 : i32
    %c0_i32_0 = arith.constant 0 : i32
    %c0_i32_1 = arith.constant 0 : i32
    return %c0_i32, %c0_i32_0 : i32, i32
  }
  func.func @transform_7(%arg0: i32) -> (i32, i32) {
    %c0_i32 = arith.constant 0 : i32
    %c0_i32_0 = arith.constant 0 : i32
    return %arg0, %c0_i32 : i32, i32
  }
}

</mosaic_0001>

<bundles_post_ra>
// kernel: mlp_actor_forward.1
= control target key start
LH: loop header
LB: loop body
LE: loop exit
PB: predicated region body
PF: predicated region fallthrough
CT: control target
= control target key end

     0   :  { %s973_s24 = smov 0   ;;  %s1154_s0 = inlined_call_operand.vmem [shape: f32[64,128], index: 0, kind: input, shape index: {}]   ;;  %s1155_s1 = inlined_call_operand.vmem [shape: f32[128,128], index: 1, kind: input, shape index: {}]   ;;  %s1156_s2 = inlined_call_operand.vmem [shape: f32[1,128], index: 2, kind: input, shape index: {}]   ;;  %s1157_s3 = inlined_call_operand.vmem [shape: f32[128,128], index: 3, kind: input, shape index: {}]   ;;  %s1158_s4 = inlined_call_operand.vmem [shape: f32[1,128], index: 4, kind: input, shape index: {}]   ;;  %s1159_s5 = inlined_call_operand.vmem [shape: f32[128,128], index: 5, kind: input, shape index: {}]   ;;  %s1160_s6 = inlined_call_operand.vmem [shape: f32[1,128], index: 6, kind: input, shape index: {}]   ;;  %s1161_s7 = inlined_call_operand.vmem [shape: f32[64,128], index: 7, kind: output, shape index: {}]  }
   0x1 LB: > { %s644_s25 = sadd.s32 4294967295, %s931_s24   ;;  %p648_p0 = scmp.ge.s32.totalorder %s931_s24, 1  ;;  %s931_s24 = sphi %s973_s24, %s17_s24  }
   0x2   : > { %p238_p1 = scmp.lt.s32.totalorder %s931_s24, 5 }
   0x4   : > { %p239_p2 = pnand %p648_p0, %p238_p1 }
   0x5   : > { %v284_v0 = vld [vmem:[%s1155_s1] sm:$0xff] (!%p239_p2)  ;;  %v285_v1 = vld [vmem:[%s1155_s1 + $0x8] sm:$0xff] (!%p239_p2)  ;;  %v286_v2 = vld [vmem:[%s1155_s1 + $0x10] sm:$0xff] (!%p239_p2)  ;;  %s649_s9 = sshll.u32 (!%p239_p2), %s644_s25, 1 }
   0x6   : > { %242 = sbr.rel (%p239_p2) target bundleno = 705 (0x2c1), region = 48  ;;  %v817_v3 = vpack.c.bf16 (!%p239_p2), %v285_v1, %v284_v0  ;;  %v287_v4 = vld [vmem:[%s1155_s1 + $0x18] sm:$0xff] (!%p239_p2)  ;;  %p271_p3 = scmp.lt.s32.totalorder (!%p239_p2), %s649_s9, 7  ;;  %v288_v6 = vld [vmem:[%s1155_s1 + $0x20] sm:$0xff] (!%p239_p2)  ;;  %v289_v7 = vld [vmem:[%s1155_s1 + $0x28] sm:$0xff] (!%p239_p2) }
   0x7   : > { %v821_v5 = vpack.c.bf16 (!%p239_p2), %v287_v4, %v286_v2  ;;  %v825_v8 = vpack.c.bf16 (!%p239_p2), %v289_v7, %v288_v6  ;;  %v290_v9 = vld [vmem:[%s1155_s1 + $0x30] sm:$0xff] (!%p239_p2)  ;;  %v384_v10 = vld [vmem:[%s1157_s3] sm:$0xff] (!%p239_p2)  ;;  %v385_v11 = vld [vmem:[%s1157_s3 + $0x8] sm:$0xff] (!%p239_p2) }
   0x8   : > { %818 = vmatprep.subr.bf16.mxu0 (!%p239_p2), %v817_v3  ;;  %v291_v12 = vld [vmem:[%s1155_s1 + $0x38] sm:$0xff] (!%p239_p2)  ;;  %v849_v13 = vpack.c.bf16 (!%p239_p2), %v385_v11, %v384_v10  ;;  %v386_v14 = vld [vmem:[%s1157_s3 + $0x10] sm:$0xff] (!%p239_p2)  ;;  %v388_v18 = vld [vmem:[%s1157_s3 + $0x20] sm:$0xff] (!%p239_p2) }
   0x9   : > { %820 = vmatpush3.bf16.msra.mxu0 (!%p239_p2), %v817_v3  ;;  %v387_v15 = vld [vmem:[%s1157_s3 + $0x18] sm:$0xff] (!%p239_p2)  ;;  %v389_v19 = vld [vmem:[%s1157_s3 + $0x28] sm:$0xff] (!%p239_p2)  ;;  %v829_v20 = vpack.c.bf16 (!%p239_p2), %v291_v12, %v290_v9  ;;  %v292_v21 = vld [vmem:[%s1155_s1 + $0x40] sm:$0xff] (!%p239_p2) }
   0xa   : > { %822 = vmatprep.subr.bf16.mxu0 (!%p239_p2), %v821_v5  ;;  %v853_v17 = vpack.c.bf16 (!%p239_p2), %v387_v15, %v386_v14  ;;  %850 = vmatprep.subr.bf16.mxu1 (!%p239_p2), %v849_v13  ;;  %v293_v22 = vld [vmem:[%s1155_s1 + $0x48] sm:$0xff] (!%p239_p2)  ;;  %v857_v23 = vpack.c.bf16 (!%p239_p2), %v389_v19, %v388_v18  ;;  %v390_v24 = vld [vmem:[%s1157_s3 + $0x30] sm:$0xff] (!%p239_p2)  ;;  %v391_v25 = vld [vmem:[%s1157_s3 + $0x38] sm:$0xff] (!%p239_p2) }
   0xb   : > { %852 = vmatpush3.bf16.msra.mxu1 (!%p239_p2), %v849_v13  ;;  %v833_v26 = vpack.c.bf16 (!%p239_p2), %v293_v22, %v292_v21  ;;  %v294_v27 = vld [vmem:[%s1155_s1 + $0x50] sm:$0xff] (!%p239_p2)  ;;  %v295_v28 = vld [vmem:[%s1155_s1 + $0x58] sm:$0xff] (!%p239_p2)  ;;  %v861_v29 = vpack.c.bf16 (!%p239_p2), %v391_v25, %v390_v24  ;;  %v392_v30 = vld [vmem:[%s1157_s3 + $0x40] sm:$0xff] (!%p239_p2) }
   0xc   : > { %854 = vmatprep.subr.bf16.mxu1 (!%p239_p2), %v853_v17  ;;  %v393_v31 = vld [vmem:[%s1157_s3 + $0x48] sm:$0xff] (!%p239_p2)  ;;  %v837_v32 = vpack.c.bf16 (!%p239_p2), %v295_v28, %v294_v27  ;;  %v296_v33 = vld [vmem:[%s1155_s1 + $0x60] sm:$0xff] (!%p239_p2)  ;;  %v394_v36 = vld [vmem:[%s1157_s3 + $0x50] sm:$0xff] (!%p239_p2) }
   0xd   : > { %s1163_s9 = smov (!%p271_p3, %s649_s9), 7  ;;  %824 = vmatpush3.bf16.msra.mxu0 %v821_v5  ;;  %v297_v34 = vld [vmem:[%s1155_s1 + $0x68] sm:$0xff]  ;;  %v865_v35 = vpack.c.bf16 %v393_v31, %v392_v30  ;;  %v395_v37 = vld [vmem:[%s1157_s3 + $0x58] sm:$0xff]  ;;  %v298_v39 = vld [vmem:[%s1155_s1 + $0x70] sm:$0xff] }
   0xe   : > { %s650_s18 = sshll.u32 %s1163_s9, 3  ;;  %826 = vmatprep.subr.bf16.mxu0 %v825_v8  ;;  %v841_v38 = vpack.c.bf16 %v297_v34, %v296_v33  ;;  %v299_v40 = vld [vmem:[%s1155_s1 + $0x78] sm:$0xff]  ;;  %v869_v41 = vpack.c.bf16 %v395_v37, %v394_v36  ;;  %v396_v42 = vld [vmem:[%s1157_s3 + $0x60] sm:$0xff]  ;;  %v397_v43 = vld [vmem:[%s1157_s3 + $0x68] sm:$0xff] }
   0xf   : > { %s1019_s28 = scalar_lea.vmem %s1154_s0, %s650_s18  ;;  %856 = vmatpush3.bf16.msra.mxu1 %v853_v17  ;;  %v845_v44 = vpack.c.bf16 %v299_v40, %v298_v39  ;;  %v873_v45 = vpack.c.bf16 %v397_v43, %v396_v42  ;;  %v398_v47 = vld [vmem:[%s1157_s3 + $0x70] sm:$0xff]  ;;  %v399_v48 = vld [vmem:[%s1157_s3 + $0x78] sm:$0xff]  ;;  %v484_v50 = vld [vmem:[%s1159_s5] sm:$0xff]  ;;  %s280_s13 = scalar_lea.vmem %s1161_s7, %s650_s18 }
  0x10   : > { %v282_v16 = vld [vmem:[%s1019_s28] sm:$0xff]  ;;  %858 = vmatprep.subr.bf16.mxu1 %v857_v23  ;;  %v283_v46 = vld [vmem:[%s1019_s28 + $0x8] sm:$0xff]  ;;  %v877_v49 = vpack.c.bf16 %v399_v48, %v398_v47  ;;  %v486_v52 = vld [vmem:[%s1159_s5 + $0x10] sm:$0xff] }
  0x11   : > { %744 = vmatprep.mubr.f32.mxu0 %v282_v16  ;;  %828 = vmatpush3.bf16.msra.mxu0 %v825_v8  ;;  %v485_v51 = vld [vmem:[%s1159_s5 + $0x8] sm:$0xff]  ;;  %v487_v54 = vld [vmem:[%s1159_s5 + $0x18] sm:$0xff]  ;;  %v488_v56 = vld [vmem:[%s1159_s5 + $0x20] sm:$0xff] }
  0x12   : > { %830 = vmatprep.subr.bf16.mxu0 %v829_v20  ;;  %v881_v53 = vpack.c.bf16 %v485_v51, %v484_v50  ;;  %v885_v55 = vpack.c.bf16 %v487_v54, %v486_v52  ;;  %v489_v57 = vld [vmem:[%s1159_s5 + $0x28] sm:$0xff]  ;;  %v490_v59 = vld [vmem:[%s1159_s5 + $0x30] sm:$0xff]  ;;  %v491_v60 = vld [vmem:[%s1159_s5 + $0x38] sm:$0xff] }
  0x13   : > { %860 = vmatpush3.bf16.msra.mxu1 %v857_v23  ;;  %v889_v58 = vpack.c.bf16 %v489_v57, %v488_v56  ;;  %v893_v61 = vpack.c.bf16 %v491_v60, %v490_v59  ;;  %v492_v62 = vld [vmem:[%s1159_s5 + $0x40] sm:$0xff]  ;;  %v493_v63 = vld [vmem:[%s1159_s5 + $0x48] sm:$0xff]  ;;  %v494_v1 = vld [vmem:[%s1159_s5 + $0x50] sm:$0xff] }
  0x14   : > { %862 = vmatprep.subr.bf16.mxu1 %v861_v29  ;;  %v897_v0 = vpack.c.bf16 %v493_v63, %v492_v62  ;;  %v495_v2 = vld [vmem:[%s1159_s5 + $0x58] sm:$0xff]  ;;  %v496_v4 = vld [vmem:[%s1159_s5 + $0x60] sm:$0xff]  ;;  %v497_v5 = vld [vmem:[%s1159_s5 + $0x68] sm:$0xff] }
  0x15   : > { %832 = vmatpush3.bf16.msra.mxu0 %v829_v20  ;;  %v901_v3 = vpack.c.bf16 %v495_v2, %v494_v1  ;;  %v905_v6 = vpack.c.bf16 %v497_v5, %v496_v4  ;;  %v653_v7 = vld [vmem:[%s1156_s2] ss:$0 sm:$0xff]  ;;  %v498_v14 = vld [vmem:[%s1159_s5 + $0x70] sm:$0xff]  ;;  %v499_v15 = vld [vmem:[%s1159_s5 + $0x78] sm:$0xff] }
  0x16   : > { %834 = vmatprep.subr.bf16.mxu0 %v833_v26  ;;  %v909_v16 = vpack.c.bf16 %v499_v15, %v498_v14  ;;  %v654_v17 = vld [vmem:[%s1158_s4] ss:$0 sm:$0xff] }
  0x17   : > { %864 = vmatpush3.bf16.msra.mxu1 %v861_v29  ;;  %v655_v24 = vld [vmem:[%s1160_s6] ss:$0 sm:$0xff] }
  0x18   : > { %866 = vmatprep.subr.bf16.mxu1 %v865_v35 }
  0x19   : > { %836 = vmatpush3.bf16.msra.mxu0 %v833_v26 }
  0x1a   : > { %838 = vmatprep.subr.bf16.mxu0 %v837_v32 }
  0x1b   : > { %868 = vmatpush3.bf16.msra.mxu1 %v865_v35 }
  0x1c   : > { %870 = vmatprep.subr.bf16.mxu1 %v869_v41 }
  0x1d   : > { %840 = vmatpush3.bf16.msra.mxu0 %v837_v32 }
  0x1e   : > { %842 = vmatprep.subr.bf16.mxu0 %v841_v38 }
  0x1f   : > { %872 = vmatpush3.bf16.msra.mxu1 %v869_v41 }
  0x20   : > { %874 = vmatprep.subr.bf16.mxu1 %v873_v45 }
  0x21   : > { %844 = vmatpush3.bf16.msra.mxu0 %v841_v38 }
  0x22   : > { %846 = vmatprep.subr.bf16.mxu0 %v845_v44 }
  0x23   : > { %876 = vmatpush3.bf16.msra.mxu1 %v873_v45 }
  0x24   : > { %878 = vmatprep.subr.bf16.mxu1 %v877_v49 }
  0x25   : > { %848 = vmatpush3.bf16.msra.mxu0 %v845_v44 }
  0x26   : > { %882 = vmatprep.subr.bf16.mxu0 %v881_v53 }
  0x27   : > { %880 = vmatpush3.bf16.msra.mxu1 %v877_v49 }
  0x28   : > { %745 = vmatmul.mubr.f32.vlgmr.msra.gmra.mrb[0].mxu0 %v283_v46 }
  0x29   : > { %884 = vmatpush3.bf16.msra.mxu0 %v881_v53 }
  0x2a   : > { %886 = vmatprep.subr.bf16.mxu0 %v885_v55 }
  0x2d   : > { %888 = vmatpush3.bf16.msra.mxu0 %v885_v55 }
  0x2e   : > { %890 = vmatprep.subr.bf16.mxu0 %v889_v58 }
  0x31   : > { %892 = vmatpush3.bf16.msra.mxu0 %v889_v58 }
  0x32   : > { %894 = vmatprep.subr.bf16.mxu0 %v893_v61 }
  0x35   : > { %896 = vmatpush3.bf16.msra.mxu0 %v893_v61 }
  0x36   : > { %898 = vmatprep.subr.bf16.mxu0 %v897_v0 }
  0x39   : > { %900 = vmatpush3.bf16.msra.mxu0 %v897_v0 }
  0x3a   : > { %902 = vmatprep.subr.bf16.mxu0 %v901_v3 }
  0x3d   : > { %904 = vmatpush3.bf16.msra.mxu0 %v901_v3 }
  0x3e   : > { %906 = vmatprep.subr.bf16.mxu0 %v905_v6 }
  0x41   : > { %908 = vmatpush3.bf16.msra.mxu0 %v905_v6 }
  0x42   : > { %910 = vmatprep.subr.bf16.mxu0 %v909_v16 }
  0x45   : > { %912 = vmatpush3.bf16.msra.mxu0 %v909_v16 }
  0xfb   : > { %v746_v8 = vpop.f32.mrb[0].mxu0 }
  0xfc   : > { %v379_v9 = vadd.f32 %v746_v8, %v653_v7  ;;  %v373_v10 = vpop.f32.mrb[1].mxu0 }
  0xfd   : > { %v374_v11 = vadd.f32 %v653_v7, %v373_v10 }
  0xfe   : > { %v383_v13 = vmax.f32 %v379_v9, 0.0 }
  0xff   : > { %v382_v12 = vmax.f32 %v374_v11, 0.0 }
 0x101   : > { %779 = vmatprep.mubr.f32.mxu1 %v382_v12 }
 0x102   : > { %780 = vmatmul.mubr.f32.vlgmr.msra.gmra.mrb[0].mxu1 %v383_v13 }
 0x1d5   : > { %v781_v18 = vpop.f32.mrb[0].mxu1 }
 0x1d6   : > { %v479_v19 = vadd.f32 %v781_v18, %v654_v17  ;;  %v473_v20 = vpop.f32.mrb[1].mxu1 }
 0x1d7   : > { %v474_v21 = vadd.f32 %v654_v17, %v473_v20 }
 0x1d8   : > { %v483_v23 = vmax.f32 %v479_v19, 0.0 }
 0x1d9   : > { %v482_v22 = vmax.f32 %v474_v21, 0.0 }
 0x1db   : > { %814 = vmatprep.mubr.f32.mxu0 %v482_v22 }
 0x1dc   : > { %815 = vmatmul.mubr.f32.vlgmr.msra.gmra.mrb[2].mxu0 %v483_v23 }
 0x2af   : > { %v816_v25 = vpop.f32.mrb[2].mxu0 }
 0x2b0   : > { %v579_v26 = vadd.f32 %v816_v25, %v655_v24  ;;  %v573_v27 = vpop.f32.mrb[3].mxu0 }
 0x2b1   : > { %v574_v28 = vadd.f32 %v655_v24, %v573_v27 }
 0x2b2   : > { %921 = vtanh.f32 %v579_v26 }
 0x2b3   : > { %923 = vtanh.f32 %v574_v28 }
 0x2bc   : > { %v922_v29 = vpop.eup %921 }
 0x2bd   : > { %v924_v30 = vpop.eup %923  ;;  %v585_v32 = vmul.f32 2.0, %v922_v29 }
 0x2be   : > { %v584_v31 = vmul.f32 2.0, %v924_v30 }
 0x2bf   : > { %587 = vst [vmem:[%s280_s13 + $0x8] sm:$0xff] %v585_v32 }
 0x2c0   : > { %586 = vst [vmem:[%s280_s13] sm:$0xff] %v584_v31 }
 0x2c1 PF: > { %s17_s24 = sadd.s32 1, %s931_s24  }
 0x2c2   : > { %p14_p4 = scmp.ge.s32.totalorder %s17_s24, 6  }
 0x2c4   :  { %16 = sbr.rel (!%p14_p4) target bundleno = 1 (0x1), region = 78 }

</bundles_post_ra>
